<compile_context>
chip_gen: v7x
topology: tpu7x:2x2x1
jax: 0.10.0
libtpu: 0.0.40
codegen_flags: <defaults>
</compile_context>

<pallas_src>
import jax
import jax.numpy as jnp
from jax.experimental import pallas as pl
from jax.experimental.pallas import tpu as pltpu

OBS_DIM = 4      # env.observation_space.shape[0] for CartPole-v0
HIDDEN = 128
N_ACTIONS = 2    # env.action_space.n for CartPole-v0
LANE = 128       # TPU lane width
MAX_TB = 4096    # batch-tile cap (per-step VMEM footprint ~2 MiB, well under limits)
PACK1_COLS = 8   # packed fc1 params: cols 0..3 = w1, col 4 = b1, rest zero


def _round_up(n, m):
    return ((n + m - 1) // m) * m


def policy_net_kernel(xT_ref, pA_ref, pB_ref, o_ref):
    # xT: [OBS_DIM, TB] -- batch on the lane axis, so every intermediate and
    # the output store are lane-dense.
    xT = xT_ref[...]
    tb = xT.shape[1]

    pA = pA_ref[...]                              # [HIDDEN, 8]
    w1 = pA[:, 0:OBS_DIM]                         # [HIDDEN, OBS_DIM] (PyTorch [out,in])
    b1 = pA[:, OBS_DIM:OBS_DIM + 1]               # [HIDDEN, 1]

    # --- fc1 + ReLU (VPU broadcast-FMAs; K=4 too small to feed the MXU) -----
    hT = jnp.broadcast_to(b1, (HIDDEN, tb))       # [HIDDEN, TB]
    for k in range(OBS_DIM):                      # static unroll
        hT = hT + w1[:, k:k + 1] * xT[k:k + 1, :]
    hT = jnp.maximum(hT, 0.0)

    # --- fc2 folded to the 2-class logit difference (single MXU row) --------
    pB = pB_ref[...]                              # [1, 2*HIDDEN]
    w2d = pB[:, 0:HIDDEN]                         # [1, HIDDEN] = w2[1]-w2[0]
    b2d = pB[:, HIDDEN:HIDDEN + 1]                # [1, 1]      = b2[1]-b2[0]
    d = jnp.dot(w2d, hT, preferred_element_type=jnp.float32) + b2d  # [1, TB]

    # 2-way softmax: p(a=1) = sigmoid(logit1 - logit0), p(a=0) = 1 - p(a=1)
    p1 = jax.nn.sigmoid(d)                        # [1, TB]
    o_ref[...] = jnp.concatenate([1.0 - p1, p1], axis=0).astype(o_ref.dtype)


def policy_net_forward(x, w1, b1, w2, b2):
    """x: [B, OBS_DIM] f32; weights in PyTorch layout (w: [out, in], b: [out]).
    Returns [B, N_ACTIONS] softmax probabilities."""
    B = x.shape[0]

    # --- batch-tile / grid selection ----------------------------------------
    Bp_min = max(_round_up(B, LANE), LANE)
    if Bp_min <= 2 * LANE:
        TB = Bp_min                       # tiny batch: one step (nothing to shard)
    else:
        # Large batch: big tiles (cap MAX_TB) but keep >= 2 grid steps so the
        # "parallel" axis can shard across v7x's two TensorCores.
        TB = min(_round_up(pl.cdiv(Bp_min, 2), LANE), MAX_TB)
    Bp = _round_up(Bp_min, TB)            # pad batch to a multiple of the tile
    grid = Bp // TB

    # --- wrapper-side layout (single pad of x^T; params packed into 2 blocks)
    xT = jnp.pad(x.astype(jnp.float32).T, ((0, 0), (0, Bp - B)))   # [OBS_DIM, Bp]

    w1f = w1.astype(jnp.float32)
    b1f = b1.astype(jnp.float32)
    w2f = w2.astype(jnp.float32)
    b2f = b2.astype(jnp.float32)

    pA = jnp.zeros((HIDDEN, PACK1_COLS), jnp.float32)
    pA = pA.at[:, 0:OBS_DIM].set(w1f).at[:, OBS_DIM].set(b1f)       # [128, 8]

    pB = jnp.zeros((1, 2 * HIDDEN), jnp.float32)
    pB = pB.at[0, 0:HIDDEN].set(w2f[1] - w2f[0]).at[0, HIDDEN].set(b2f[1] - b2f[0])

    cost = pl.CostEstimate(
        flops=2 * Bp * (OBS_DIM * HIDDEN + HIDDEN),
        transcendentals=Bp,
        bytes_accessed=4 * (Bp * (OBS_DIM + N_ACTIONS)
                            + HIDDEN * PACK1_COLS + 2 * HIDDEN),
    )

    outT = pl.pallas_call(
        policy_net_kernel,
        out_shape=jax.ShapeDtypeStruct((N_ACTIONS, Bp), jnp.float32),
        grid=(grid,),
        in_specs=[
            pl.BlockSpec((OBS_DIM, TB), lambda i: (0, i)),           # x^T batch tile
            pl.BlockSpec((HIDDEN, PACK1_COLS), lambda i: (0, 0)),    # packed w1|b1
            pl.BlockSpec((1, 2 * HIDDEN), lambda i: (0, 0)),         # packed w2d|b2d
        ],
        out_specs=pl.BlockSpec((N_ACTIONS, TB), lambda i: (0, i)),
        compiler_params=pltpu.CompilerParams(
            dimension_semantics=("parallel",)),   # shard batch tiles across TCs (v7x)
        cost_estimate=cost,
    )(xT, pA, pB)

    return outT[:, :B].T


def init_params(key):
    """PyTorch nn.Linear default init: U(-1/sqrt(fan_in), 1/sqrt(fan_in)), PyTorch layout."""
    k1, k2, k3, k4 = jax.random.split(key, 4)
    bound1 = 1.0 / jnp.sqrt(jnp.float32(OBS_DIM))
    bound2 = 1.0 / jnp.sqrt(jnp.float32(HIDDEN))
    w1 = jax.random.uniform(k1, (HIDDEN, OBS_DIM), jnp.float32, -bound1, bound1)
    b1 = jax.random.uniform(k2, (HIDDEN,), jnp.float32, -bound1, bound1)
    w2 = jax.random.uniform(k3, (N_ACTIONS, HIDDEN), jnp.float32, -bound2, bound2)
    b2 = jax.random.uniform(k4, (N_ACTIONS,), jnp.float32, -bound2, bound2)
    return w1, b1, w2, b2


if __name__ == "__main__":
    key = jax.random.PRNGKey(0)
    k_x, k_x2, k_p = jax.random.split(key, 3)
    w1, b1, w2, b2 = init_params(k_p)

    fwd = jax.jit(policy_net_forward)

    def reference(x):
        h = jnp.maximum(x @ w1.T + b1, 0.0)
        return jax.nn.softmax(h @ w2.T + b2, axis=-1)

    # Small per-step case (B=2, like CartPole env.step batching a couple envs)
    batch = 2
    x = jax.random.normal(k_x, (batch, OBS_DIM), jnp.float32)
    probs = jax.block_until_ready(fwd(x, w1, b1, w2, b2))
    assert probs.shape == (batch, N_ACTIONS)
    assert jnp.allclose(probs, reference(x), atol=1e-5), "mismatch vs reference (B=2)"
    assert jnp.allclose(jnp.sum(probs, axis=-1), 1.0, atol=1e-5)

    # Larger rollout-style batch exercising the multi-step "parallel" grid path
    batch2 = 384
    x2 = jax.random.normal(k_x2, (batch2, OBS_DIM), jnp.float32)
    probs2 = jax.block_until_ready(fwd(x2, w1, b1, w2, b2))
    assert probs2.shape == (batch2, N_ACTIONS)
    assert jnp.allclose(probs2, reference(x2), atol=1e-5), "mismatch vs reference (B=384)"
    assert jnp.allclose(jnp.sum(probs2, axis=-1), 1.0, atol=1e-5)

    print("KERNEL_OK")
</pallas_src>

<mosaic_0001>
module attributes {stable_mosaic.version = 11 : i64} {
  func.func @policy_net_kernel(%arg0: i32, %arg1: memref<4x128xf32, #tpu.memory_space<vmem>>, %arg2: memref<128x8xf32, #tpu.memory_space<vmem>>, %arg3: memref<1x256xf32, #tpu.memory_space<vmem>>, %arg4: memref<2x128xf32, #tpu.memory_space<vmem>>) attributes {dimension_semantics = [#tpu.dimension_semantics<parallel>], iteration_bounds = array<i64: 1>, scalar_prefetch = 0 : i64, scratch_operands = 0 : i64, tpu.core_type = #tpu.core_type<tc>, window_params = [{transform_indices = @transform_0, window_bounds = array<i64: 4, 128>}, {pipeline_mode = #tpu.pipeline_mode<synchronous>, transform_indices = @transform_1, window_bounds = array<i64: 128, 8>}, {pipeline_mode = #tpu.pipeline_mode<synchronous>, transform_indices = @transform_2, window_bounds = array<i64: 1, 256>}, {transform_indices = @transform_3, window_bounds = array<i64: 2, 128>}]} {
    %c0 = arith.constant 0 : index
    %c0_0 = arith.constant 0 : index
    %0 = vector.load %arg1[%c0, %c0_0] : memref<4x128xf32, #tpu.memory_space<vmem>>, vector<4x128xf32>
    %c0_1 = arith.constant 0 : index
    %c0_2 = arith.constant 0 : index
    %1 = vector.load %arg2[%c0_1, %c0_2] : memref<128x8xf32, #tpu.memory_space<vmem>>, vector<128x8xf32>
    %2 = vector.extract_strided_slice %1 {offsets = [0, 0], sizes = [128, 4], strides = [1, 1]} : vector<128x8xf32> to vector<128x4xf32>
    %3 = vector.extract_strided_slice %1 {offsets = [0, 4], sizes = [128, 1], strides = [1, 1]} : vector<128x8xf32> to vector<128x1xf32>
    %4 = vector.shape_cast %3 : vector<128x1xf32> to vector<128x1xf32>
    %5 = vector.broadcast %4 : vector<128x1xf32> to vector<128x128xf32>
    %6 = vector.extract_strided_slice %2 {offsets = [0, 0], sizes = [128, 1], strides = [1, 1]} : vector<128x4xf32> to vector<128x1xf32>
    %7 = vector.extract_strided_slice %0 {offsets = [0, 0], sizes = [1, 128], strides = [1, 1]} : vector<4x128xf32> to vector<1x128xf32>
    %8 = vector.broadcast %6 : vector<128x1xf32> to vector<128x128xf32>
    %9 = vector.broadcast %7 : vector<1x128xf32> to vector<128x128xf32>
    %10 = arith.mulf %8, %9 : vector<128x128xf32>
    %11 = arith.addf %5, %10 : vector<128x128xf32>
    %12 = vector.extract_strided_slice %2 {offsets = [0, 1], sizes = [128, 1], strides = [1, 1]} : vector<128x4xf32> to vector<128x1xf32>
    %13 = vector.extract_strided_slice %0 {offsets = [1, 0], sizes = [1, 128], strides = [1, 1]} : vector<4x128xf32> to vector<1x128xf32>
    %14 = vector.broadcast %12 : vector<128x1xf32> to vector<128x128xf32>
    %15 = vector.broadcast %13 : vector<1x128xf32> to vector<128x128xf32>
    %16 = arith.mulf %14, %15 : vector<128x128xf32>
    %17 = arith.addf %11, %16 : vector<128x128xf32>
    %18 = vector.extract_strided_slice %2 {offsets = [0, 2], sizes = [128, 1], strides = [1, 1]} : vector<128x4xf32> to vector<128x1xf32>
    %19 = vector.extract_strided_slice %0 {offsets = [2, 0], sizes = [1, 128], strides = [1, 1]} : vector<4x128xf32> to vector<1x128xf32>
    %20 = vector.broadcast %18 : vector<128x1xf32> to vector<128x128xf32>
    %21 = vector.broadcast %19 : vector<1x128xf32> to vector<128x128xf32>
    %22 = arith.mulf %20, %21 : vector<128x128xf32>
    %23 = arith.addf %17, %22 : vector<128x128xf32>
    %24 = vector.extract_strided_slice %2 {offsets = [0, 3], sizes = [128, 1], strides = [1, 1]} : vector<128x4xf32> to vector<128x1xf32>
    %25 = vector.extract_strided_slice %0 {offsets = [3, 0], sizes = [1, 128], strides = [1, 1]} : vector<4x128xf32> to vector<1x128xf32>
    %26 = vector.broadcast %24 : vector<128x1xf32> to vector<128x128xf32>
    %27 = vector.broadcast %25 : vector<1x128xf32> to vector<128x128xf32>
    %28 = arith.mulf %26, %27 : vector<128x128xf32>
    %29 = arith.addf %23, %28 : vector<128x128xf32>
    %cst = arith.constant 0.000000e+00 : f32
    %30 = vector.broadcast %cst : f32 to vector<128x128xf32>
    %31 = arith.maximumf %29, %30 : vector<128x128xf32>
    %c0_3 = arith.constant 0 : index
    %c0_4 = arith.constant 0 : index
    %32 = vector.load %arg3[%c0_3, %c0_4] : memref<1x256xf32, #tpu.memory_space<vmem>>, vector<1x256xf32>
    %33 = vector.extract_strided_slice %32 {offsets = [0, 0], sizes = [1, 128], strides = [1, 1]} : vector<1x256xf32> to vector<1x128xf32>
    %34 = vector.extract_strided_slice %32 {offsets = [0, 128], sizes = [1, 1], strides = [1, 1]} : vector<1x256xf32> to vector<1x1xf32>
    %cst_5 = arith.constant dense<0.000000e+00> : vector<1x128xf32>
    %35 = tpu.matmul %33, %31, %cst_5 {dimension_numbers = #tpu.dot_dimension_numbers<[1], [0], [0], [1], [0, 0, 1, 1], [], []>} : vector<1x128xf32>, vector<128x128xf32>, vector<1x128xf32> -> vector<1x128xf32>
    %36 = vector.broadcast %34 : vector<1x1xf32> to vector<1x128xf32>
    %37 = arith.addf %35, %36 : vector<1x128xf32>
    %38 = arith.negf %37 : vector<1x128xf32>
    %39 = math.exp %38 : vector<1x128xf32>
    %cst_6 = arith.constant 1.000000e+00 : f32
    %40 = vector.broadcast %cst_6 : f32 to vector<1x128xf32>
    %41 = arith.addf %40, %39 : vector<1x128xf32>
    %42 = arith.divf %40, %41 : vector<1x128xf32>
    %cst_7 = arith.constant 1.000000e+00 : f32
    %43 = vector.broadcast %cst_7 : f32 to vector<1x128xf32>
    %44 = arith.subf %43, %42 : vector<1x128xf32>
    %45 = tpu.concatenate %44, %42 in 0 : vector<1x128xf32>, vector<1x128xf32> -> vector<2x128xf32>
    %c0_8 = arith.constant 0 : index
    %c0_9 = arith.constant 0 : index
    %46 = vector.load %arg4[%c0_8, %c0_9] : memref<2x128xf32, #tpu.memory_space<vmem>>, vector<2x128xf32>
    tpu.vector_store %arg4[%c0_8, %c0_9], %45 {strides = array<i32>} : memref<2x128xf32, #tpu.memory_space<vmem>>, vector<2x128xf32>,
    return
  }
  func.func @transform_0(%arg0: i32) -> (i32, i32) {
    %c0_i32 = arith.constant 0 : i32
    %c0_i32_0 = arith.constant 0 : i32
    return %c0_i32, %arg0 : i32, i32
  }
  func.func @transform_1(%arg0: i32) -> (i32, i32) {
    %c0_i32 = arith.constant 0 : i32
    %c0_i32_0 = arith.constant 0 : i32
    %c0_i32_1 = arith.constant 0 : i32
    return %c0_i32, %c0_i32_0 : i32, i32
  }
  func.func @transform_2(%arg0: i32) -> (i32, i32) {
    %c0_i32 = arith.constant 0 : i32
    %c0_i32_0 = arith.constant 0 : i32
    %c0_i32_1 = arith.constant 0 : i32
    return %c0_i32, %c0_i32_0 : i32, i32
  }
  func.func @transform_3(%arg0: i32) -> (i32, i32) {
    %c0_i32 = arith.constant 0 : i32
    %c0_i32_0 = arith.constant 0 : i32
    return %c0_i32, %arg0 : i32, i32
  }
}

</mosaic_0001>

<bundles_post_ra>
// kernel: policy_net_forward.1
= control target key start
LH: loop header
LB: loop body
LE: loop exit
PB: predicated region body
PF: predicated region fallthrough
CT: control target
= control target key end

     0   :  { %v761_v0 = vmov 2   ;;  %v762_v1 = vmov 4   ;;  %v763_v6 = vmov 3   ;;  %v764_v7 = vmov 1   ;;  %s1152_s1 = inlined_call_operand.vmem [shape: f32[128,8], index: 1, kind: input, shape index: {}]   ;;  %s1153_s0 = inlined_call_operand.vmem [shape: f32[4,128], index: 0, kind: input, shape index: {}]   ;;  %s1154_s2 = inlined_call_operand.vmem [shape: f32[1,256], index: 2, kind: input, shape index: {}]   ;;  %s1155_s3 = inlined_call_operand.vmem [shape: f32[2,128], index: 3, kind: output, shape index: {}]  }
   0x1   :  { %718 = vset.pattern.permute.xlu0 %v761_v0  ;;  %709 = vset.pattern.permute.xlu1 %v762_v1  ;;  %v794_v2 = vld [vmem:[%s1152_s1 + $0x18] sm:$0xff]  ;;  %v799_v3 = vld [vmem:[%s1152_s1] sm:$0xff]  ;;  %v16_v5 = vld [vmem:[%s1152_s1 + $0x8] sm:$0xff]  ;;  %v765_v9 = vmov 0   ;;  %v766_v19 = vmov 0.0|0.0   ;;  %v175_v47 = vlaneseq  ;;  %vm767_vm0 = vmmov 0  }
   0x2   :  { %324 = vperm.xlu0 %718, %v794_v2   ;;  %33 = vperm.xlu1 %709, %v799_v3   ;;  %v806_v4 = vld [vmem:[%s1152_s1 + $0x20] sm:$0xff]  ;;  %v17_v8 = vld [vmem:[%s1152_s1 + $0x10] sm:$0xff]  ;;  %v823_v10 = vld [vmem:[%s1152_s1 + $0x48] sm:$0xff]  ;;  %vm617_vm1 = vcmask 1040384  }
   0x3   :  { %v830_v11 = vld [vmem:[%s1152_s1 + $0x50] sm:$0xff]  ;;  %v20_v12 = vld [vmem:[%s1152_s1 + $0x28] sm:$0xff]  ;;  %v852_v13 = vld [vmem:[%s1152_s1 + $0x78] sm:$0xff]  ;;  %677 = vmatprep.subr.bf16.mxu0 %v766_v19  ;;  %v978_v50 = vshrl.u32 %v175_v47, 7 }
   0x4   :  { %v22_v14 = vld [vmem:[%s1152_s1 + $0x38] sm:$0xff]  ;;  %v865_v15 = vld [vmem:[%s1152_s1 + $0x40] sm:$0xff]  ;;  %v871_v16 = vld [vmem:[%s1152_s1 + $0x68] sm:$0xff] }
   0x5   :  { %v878_v17 = vld [vmem:[%s1152_s1 + $0x70] sm:$0xff]  ;;  %v928_v26 = vld [vmem:[%s1152_s1 + $0x58] sm:$0xff]  ;;  %v960_v40 = vld [vmem:[%s1152_s1 + $0x60] sm:$0xff]  ;;  %v177_v52 = vsub.s32 0, %v978_v50  ;;  %v277_v56 = vsub.s32 1, %v978_v50  ;;  %v377_v62 = vsub.s32 2, %v978_v50 }
   0x6   :  { %328 = vperm.xlu0 %718, %v806_v4   ;;  %38 = vperm.xlu1 %709, %v16_v5   ;;  %v21_v18 = vld [vmem:[%s1152_s1 + $0x30] sm:$0xff]  ;;  %v14_v54 = vld [vmem:[%s1153_s0] sm:$0xf]  ;;  %v477_v63 = vsub.s32 3, %v978_v50 }
   0x7   :  { %v994_v57 = vrot.slane %v14_v54, %v177_v52  ;;  %v1004_v61 = vrot.slane %v14_v54, %v277_v56 }
   0xa   :  { %723 = vset.pattern.permute.xlu0 %v763_v6  ;;  %710 = vset.pattern.permute.xlu1 %v764_v7 }
   0xb   :  { %424 = vperm.xlu0 %723, %v794_v2   ;;  %216 = vperm.xlu1 %710, %v16_v5  }
   0xf   :  { %428 = vperm.xlu0 %723, %v806_v4   ;;  %711 = vset.pattern.permute.xlu1 %v765_v9 }
  0x10   :  { %120 = vperm.xlu1 %711, %v17_v8  }
  0x13   :  { %448 = vperm.xlu0 %723, %v823_v10  }
  0x14   :  { %712 = vset.pattern.permute.xlu1 %v761_v0 }
  0x15   :  { %312 = vperm.xlu1 %712, %v799_v3  }
  0x17   :  { %452 = vperm.xlu0 %723, %v830_v11  }
  0x19   :  { %316 = vperm.xlu1 %712, %v16_v5  }
  0x1b   :  { %742 = vset.pattern.permute.xlu0 %v765_v9 }
  0x1c   :  { %112 = vperm.xlu0 %742, %v799_v3  }
  0x1d   :  { %713 = vset.pattern.permute.xlu1 %v762_v1 }
  0x1e   :  { %48 = vperm.xlu1 %713, %v794_v2  }
  0x20   :  { %116 = vperm.xlu0 %742, %v16_v5  }
  0x22   :  { %714 = vset.pattern.permute.xlu1 %v764_v7 }
  0x23   :  { %220 = vperm.xlu1 %714, %v17_v8  }
  0x24   :  { %124 = vperm.xlu0 %742, %v794_v2  }
  0x27   :  { %715 = vset.pattern.permute.xlu1 %v763_v6 }
  0x28   :  { %128 = vperm.xlu0 %742, %v806_v4   ;;  %412 = vperm.xlu1 %715, %v799_v3  }
  0x2c   :  { %148 = vperm.xlu0 %742, %v823_v10   ;;  %416 = vperm.xlu1 %715, %v16_v5  }
  0x30   :  { %152 = vperm.xlu0 %742, %v830_v11   ;;  %716 = vset.pattern.permute.xlu1 %v765_v9 }
  0x31   :  { %132 = vperm.xlu1 %716, %v20_v12  }
  0x34   :  { %172 = vperm.xlu0 %742, %v852_v13  }
  0x35   :  { %717 = vset.pattern.permute.xlu1 %v761_v0 }
  0x36   :  { %320 = vperm.xlu1 %717, %v17_v8  }
  0x38   :  { %745 = vset.pattern.permute.xlu0 %v762_v1 }
  0x39   :  { %43 = vperm.xlu0 %745, %v17_v8  }
  0x3a   :  { %719 = vset.pattern.permute.xlu1 %v762_v1 }
  0x3b   :  { %53 = vperm.xlu1 %719, %v806_v4  }
  0x3d   :  { %68 = vperm.xlu0 %745, %v22_v14  }
  0x3f   :  { %58 = vperm.xlu1 %719, %v20_v12  }
  0x41   :  { %73 = vperm.xlu0 %745, %v865_v15  }
  0x43   :  { %720 = vset.pattern.permute.xlu1 %v764_v7 }
  0x44   :  { %232 = vperm.xlu1 %720, %v20_v12  }
  0x45   :  { %98 = vperm.xlu0 %745, %v871_v16  }
  0x48   :  { %721 = vset.pattern.permute.xlu1 %v763_v6 }
  0x49   :  { %103 = vperm.xlu0 %745, %v878_v17   ;;  %420 = vperm.xlu1 %721, %v17_v8  }
  0x4d   :  { %747 = vset.pattern.permute.xlu0 %v764_v7  ;;  %722 = vset.pattern.permute.xlu1 %v765_v9 }
  0x4e   :  { %212 = vperm.xlu0 %747, %v799_v3   ;;  %136 = vperm.xlu1 %722, %v21_v18  }
  0x52   :  { %224 = vperm.xlu0 %747, %v794_v2   ;;  %140 = vperm.xlu1 %722, %v22_v14  }
  0x56   :  { %228 = vperm.xlu0 %747, %v806_v4   ;;  %724 = vset.pattern.permute.xlu1 %v761_v0 }
  0x57   :  { %332 = vperm.xlu1 %724, %v20_v12  }
  0x5a   :  { %248 = vperm.xlu0 %747, %v823_v10  }
  0x5b   :  { %725 = vset.pattern.permute.xlu1 %v762_v1 }
  0x5c   :  { %63 = vperm.xlu1 %725, %v21_v18  }
  0x5e   :  { %252 = vperm.xlu0 %747, %v830_v11  }
  0x60   :  { %726 = vset.pattern.permute.xlu1 %v764_v7 }
  0x61   :  { %236 = vperm.xlu1 %726, %v21_v18  }
  0x62   :  { %272 = vperm.xlu0 %747, %v852_v13  }
  0x65   :  { %240 = vperm.xlu1 %726, %v22_v14  }
  0x66   :  { %750 = vset.pattern.permute.xlu0 %v761_v0 }
  0x67   :  { %348 = vperm.xlu0 %750, %v823_v10  }
  0x69   :  { %727 = vset.pattern.permute.xlu1 %v763_v6 }
  0x6a   :  { %432 = vperm.xlu1 %727, %v20_v12   ;;  %v1020_v12 = vrot.slane %v14_v54, %v477_v63 }
  0x6b   :  { %352 = vperm.xlu0 %750, %v830_v11  }
  0x6e   :  { %728 = vset.pattern.permute.xlu1 %v765_v9 }
  0x6f   :  { %144 = vperm.xlu1 %728, %v865_v15   ;;  %368 = vperm.xlu0 %750, %v878_v17  }
  0x73   :  { %729 = vset.pattern.permute.xlu1 %v761_v0  ;;  %754 = vset.pattern.permute.xlu0 %v763_v6 }
  0x74   :  { %336 = vperm.xlu1 %729, %v21_v18   ;;  %472 = vperm.xlu0 %754, %v852_v13  }
  0x78   :  { %340 = vperm.xlu1 %729, %v22_v14   ;;  %756 = vset.pattern.permute.xlu0 %v765_v9 }
  0x7c   :  { %730 = vset.pattern.permute.xlu1 %v762_v1 }
  0x7d   :  { %78 = vperm.xlu1 %730, %v823_v10  }
  0x81   :  { %731 = vset.pattern.permute.xlu1 %v764_v7  ;;  %v911_v20 = vpop.permute.xlu1 %33  ;;  %v913_v21 = vpop.permute.xlu0 %324 }
  0x82   :  { %244 = vperm.xlu1 %731, %v865_v15  }
  0x85   :  { %v916_v22 = vpop.permute.xlu1 %38  ;;  %v918_v23 = vpop.permute.xlu0 %328 }
  0x86   :  { %732 = vset.pattern.permute.xlu1 %v763_v6 }
  0x87   :  { %436 = vperm.xlu1 %732, %v21_v18  }
  0x8a   :  { %v921_v24 = vpop.permute.xlu1 %216  ;;  %v923_v25 = vpop.permute.xlu0 %424 }
  0x8b   :  { %440 = vperm.xlu1 %732, %v22_v14   ;;  %v280_v5 = vmul.f32 %v1004_v61, %v921_v24 }
  0x8e   :  { %v930_v27 = vpop.permute.xlu0 %428 }
  0x8f   :  { %733 = vset.pattern.permute.xlu1 %v765_v9  ;;  %v933_v28 = vpop.permute.xlu1 %120 }
  0x90   :  { %156 = vperm.xlu1 %733, %v928_v26   ;;  %v181_v8 = vmul.f32 %v994_v57, %v933_v28 }
  0x92   :  { %v936_v29 = vpop.permute.xlu0 %448 }
  0x94   :  { %734 = vset.pattern.permute.xlu1 %v761_v0  ;;  %v939_v30 = vpop.permute.xlu1 %312 }
  0x95   :  { %344 = vperm.xlu1 %734, %v865_v15  }
  0x96   :  { %v942_v31 = vpop.permute.xlu0 %452 }
  0x98   :  { %v317_v32 = vpop.permute.xlu1 %316 }
  0x99   :  { %735 = vset.pattern.permute.xlu1 %v762_v1 }
  0x9a   :  { %83 = vperm.xlu1 %735, %v830_v11   ;;  %v1018_v11 = vrot.slane %v14_v54, %v377_v62 }
  0x9b   :  { %v113_v33 = vpop.permute.xlu0 %112 }
  0x9c   :  { %v179_v10 = vmul.f32 %v994_v57, %v113_v33  ;;  %v380_v18 = vmul.f32 %v1018_v11, %v317_v32  ;;  %v382_v32 = vmul.f32 %v1018_v11, %v913_v21 }
  0x9d   :  { %v946_v34 = vpop.permute.xlu1 %48 }
  0x9e   :  { %88 = vperm.xlu1 %735, %v928_v26   ;;  %v195_v28 = vadd.f32 %v179_v10, %v911_v20  ;;  %v383_v10 = vmul.f32 %v1018_v11, %v918_v23 }
  0x9f   :  { %v117_v35 = vpop.permute.xlu0 %116 }
  0xa0   :  { %v180_v58 = vmul.f32 %v994_v57, %v117_v35 }
  0xa2   :  { %736 = vset.pattern.permute.xlu1 %v764_v7  ;;  %v221_v36 = vpop.permute.xlu1 %220  ;;  %v196_v2 = vadd.f32 %v180_v58, %v916_v22 }
  0xa3   :  { %v125_v37 = vpop.permute.xlu0 %124  ;;  %256 = vperm.xlu1 %736, %v928_v26   ;;  %v281_v33 = vmul.f32 %v1004_v61, %v221_v36 }
  0xa4   :  { %v296_v14 = vadd.f32 %v280_v5, %v196_v2  ;;  %v182_v22 = vmul.f32 %v994_v57, %v125_v37  ;;  %v379_v37 = vmul.f32 %v1018_v11, %v939_v30 }
  0xa6   :  { %v198_v54 = vadd.f32 %v182_v22, %v946_v34  ;;  %v482_v34 = vmul.f32 %v1020_v12, %v923_v25  ;;  %v483_v25 = vmul.f32 %v1020_v12, %v930_v27 }
  0xa7   :  { %737 = vset.pattern.permute.xlu1 %v763_v6  ;;  %v952_v38 = vpop.permute.xlu1 %412  ;;  %v954_v39 = vpop.permute.xlu0 %128 }
  0xa8   :  { %444 = vperm.xlu1 %737, %v865_v15   ;;  %v479_v20 = vmul.f32 %v1020_v12, %v952_v38  ;;  %v183_v36 = vmul.f32 %v994_v57, %v954_v39 }
  0xab   :  { %v417_v41 = vpop.permute.xlu1 %416  ;;  %v962_v42 = vpop.permute.xlu0 %148 }
  0xac   :  { %738 = vset.pattern.permute.xlu1 %v765_v9  ;;  %v480_v35 = vmul.f32 %v1020_v12, %v417_v41 }
  0xad   :  { %160 = vperm.xlu1 %738, %v960_v40  }
  0xaf   :  { %v966_v43 = vpop.permute.xlu0 %152 }
  0xb0   :  { %v968_v44 = vpop.permute.xlu1 %132 }
  0xb1   :  { %164 = vperm.xlu1 %738, %v871_v16  }
  0xb3   :  { %v971_v45 = vpop.permute.xlu0 %172 }
  0xb5   :  { %739 = vset.pattern.permute.xlu1 %v761_v0  ;;  %v321_v46 = vpop.permute.xlu1 %320 }
  0xb6   :  { %356 = vperm.xlu1 %739, %v928_v26   ;;  %v381_v2 = vmul.f32 %v1018_v11, %v321_v46 }
  0xb8   :  { %v44_v48 = vpop.permute.xlu0 %43 }
  0xb9   :  { %v197_v15 = vadd.f32 %v181_v8, %v44_v48  ;;  %v396_v48 = vadd.f32 %v380_v18, %v296_v14 }
  0xba   :  { %740 = vset.pattern.permute.xlu1 %v762_v1  ;;  %v976_v49 = vpop.permute.xlu1 %53 }
  0xbb   :  { %93 = vperm.xlu1 %740, %v960_v40   ;;  %v297_v41 = vadd.f32 %v281_v33, %v197_v15  ;;  %v496_v58 = vadd.f32 %v480_v35, %v396_v48  ;;  %v199_v46 = vadd.f32 %v183_v36, %v976_v49 }
  0xbc   :  { %v981_v51 = vpop.permute.xlu0 %68 }
  0xbd   :  { %v397_v38 = vadd.f32 %v381_v2, %v297_v41  ;;  %v512_v14 = vmax.f32 %v496_v58, 0.0 }
  0xbe   :  { %v984_v53 = vpop.permute.xlu1 %58 }
  0xbf   :  { %741 = vset.pattern.permute.xlu1 %v764_v7 }
  0xc0   :  { %260 = vperm.xlu1 %741, %v960_v40   ;;  %v991_v55 = vpop.permute.xlu0 %73 }
  0xc3   :  { %v997_v59 = vpop.permute.xlu1 %232 }
  0xc4   :  { %264 = vperm.xlu1 %741, %v871_v16   ;;  %v1000_v60 = vpop.permute.xlu0 %98 }
  0xc8   :  { %743 = vset.pattern.permute.xlu1 %v763_v6  ;;  %v421_v3 = vpop.permute.xlu1 %420  ;;  %v1010_v4 = vpop.permute.xlu0 %103 }
  0xc9   :  { %456 = vperm.xlu1 %743, %v928_v26   ;;  %v481_v21 = vmul.f32 %v1020_v12, %v421_v3 }
  0xcb   :  { %v497_v15 = vadd.f32 %v481_v21, %v397_v38 }
  0xcd   :  { %v213_v24 = vpop.permute.xlu0 %212  ;;  %744 = vset.pattern.permute.xlu1 %v765_v9  ;;  %v1026_v26 = vpop.permute.xlu1 %136  ;;  %v513_v48 = vmax.f32 %v497_v15, 0.0 }
  0xce   :  { %v279_v47 = vmul.f32 %v1004_v61, %v213_v24  ;;  %168 = vperm.xlu1 %744, %v878_v17   ;;  %v185_v15 = vmul.f32 %v994_v57, %v1026_v26 }
  0xd0   :  { %v295_v52 = vadd.f32 %v279_v47, %v195_v28 }
  0xd1   :  { %v225_v62 = vpop.permute.xlu0 %224  ;;  %v1041_v63 = vpop.permute.xlu1 %140 }
  0xd2   :  { %v395_v5 = vadd.f32 %v379_v37, %v295_v52  ;;  %v282_v30 = vmul.f32 %v1004_v61, %v225_v62  ;;  %746 = vset.pattern.permute.xlu1 %v761_v0  ;;  %v184_v52 = vmul.f32 %v994_v57, %v968_v44 }
  0xd3   :  { %360 = vperm.xlu1 %746, %v960_v40  }
  0xd4   :  { %v298_v39 = vadd.f32 %v282_v30, %v198_v54  ;;  %v495_v8 = vadd.f32 %v479_v20, %v395_v5  ;;  %v200_v20 = vadd.f32 %v184_v52, %v984_v53 }
  0xd5   :  { %v229_v3 = vpop.permute.xlu0 %228 }
  0xd6   :  { %v398_v18 = vadd.f32 %v382_v32, %v298_v39  ;;  %v283_v22 = vmul.f32 %v1004_v61, %v229_v3  ;;  %v333_v35 = vpop.permute.xlu1 %332  ;;  %v511_v24 = vmax.f32 %v495_v8, 0.0 }
  0xd7   :  { %364 = vperm.xlu1 %746, %v871_v16   ;;  %v384_v36 = vmul.f32 %v1018_v11, %v333_v35 }
  0xd8   :  { %v299_v28 = vadd.f32 %v283_v22, %v199_v46  ;;  %v678_v33 = vpack.c.bf16 %v512_v14, %v511_v24  ;;  %v498_v47 = vadd.f32 %v482_v34, %v398_v18  ;;  %v768_v14 = vmov 0.0  }
  0xd9   :  { %674 = vmatprep.mubr.msk.f32.mxu0 %vm767_vm0, %v768_v14  ;;  %v186_v18 = vmul.f32 %v994_v57, %v1041_v63 }
  0xda   :  { %v399_v23 = vadd.f32 %v383_v10, %v299_v28  ;;  %679 = vmatpush3.bf16.msra.mxu0 %v678_v33  ;;  %v514_v37 = vmax.f32 %v498_v47, 0.0 }
  0xdb   :  { %748 = vset.pattern.permute.xlu1 %v762_v1  ;;  %v64_v49 = vpop.permute.xlu1 %63  ;;  %680 = vmatprep.subr.bf16.mxu0 %v766_v19  ;;  %v284_v1 = vmul.f32 %v1004_v61, %v997_v59 }
  0xdc   :  { %108 = vperm.xlu1 %748, %v852_v13   ;;  %v681_v32 = vpack.c.bf16 %v514_v37, %v513_v48  ;;  %v499_v41 = vadd.f32 %v483_v25, %v399_v23  ;;  %v201_v24 = vadd.f32 %v185_v15, %v64_v49 }
  0xdd   :  { %v300_v58 = vadd.f32 %v284_v1, %v200_v20 }
  0xde   :  { %682 = vmatpush3.bf16.msra.mxu0 %v681_v32  ;;  %v515_v30 = vmax.f32 %v499_v41, 0.0 }
  0xdf   :  { %683 = vmatprep.subr.bf16.mxu0 %v766_v19  ;;  %v400_v2 = vadd.f32 %v384_v36, %v300_v58 }
  0xe0   :  { %749 = vset.pattern.permute.xlu1 %v764_v7  ;;  %v237_v27 = vpop.permute.xlu1 %236  ;;  %v249_v7 = vpop.permute.xlu0 %248 }
  0xe1   :  { %268 = vperm.xlu1 %749, %v878_v17   ;;  %v285_v22 = vmul.f32 %v1004_v61, %v237_v27 }
  0xe3   :  { %v301_v47 = vadd.f32 %v285_v22, %v201_v24 }
  0xe4   :  { %v241_v54 = vpop.permute.xlu1 %240  ;;  %v253_v53 = vpop.permute.xlu0 %252 }
  0xe5   :  { %751 = vset.pattern.permute.xlu1 %v763_v6  ;;  %v286_v25 = vmul.f32 %v1004_v61, %v241_v54 }
  0xe6   :  { %460 = vperm.xlu1 %751, %v960_v40  }
  0xe9   :  { %v433_v62 = vpop.permute.xlu1 %432 }
  0xea   :  { %v484_v21 = vmul.f32 %v1020_v12, %v433_v62  ;;  %464 = vperm.xlu1 %751, %v871_v16   ;;  %v1080_v16 = vpop.permute.xlu0 %272 }
  0xec   :  { %v500_v44 = vadd.f32 %v484_v21, %v400_v2 }
  0xee   :  { %v516_v5 = vmax.f32 %v500_v44, 0.0  ;;  %752 = vset.pattern.permute.xlu1 %v761_v0  ;;  %v1074_v59 = vpop.permute.xlu1 %144  ;;  %v188_v0 = vmul.f32 %v994_v57, %v962_v42  ;;  %v349_v39 = vpop.permute.xlu0 %348 }
  0xef   :  { %372 = vperm.xlu1 %752, %v852_v13   ;;  %v288_v13 = vmul.f32 %v1004_v61, %v249_v7  ;;  %v289_v7 = vmul.f32 %v1004_v61, %v253_v53 }
  0xf0   :  { %v684_v34 = vpack.c.bf16 %v516_v5, %v515_v30  ;;  %v489_v30 = vmul.f32 %v1020_v12, %v942_v31 }
  0xf2   :  { %685 = vmatpush3.bf16.msra.mxu0 %v684_v34  ;;  %v353_v58 = vpop.permute.xlu0 %352 }
  0xf3   :  { %753 = vset.pattern.permute.xlu1 %v763_v6  ;;  %v337_v40 = vpop.permute.xlu1 %336  ;;  %686 = vmatprep.subr.bf16.mxu0 %v766_v19  ;;  %v388_v6 = vmul.f32 %v1018_v11, %v349_v39  ;;  %v389_v21 = vmul.f32 %v1018_v11, %v353_v58 }
  0xf4   :  { %468 = vperm.xlu1 %753, %v878_v17   ;;  %v1090_v17 = vld [vmem:[%s1154_s2] sm:$0x3]  ;;  %v385_v28 = vmul.f32 %v1018_v11, %v337_v40  ;;  %v187_v40 = vmul.f32 %v994_v57, %v1074_v59 }
  0xf6   :  { %v401_v37 = vadd.f32 %v385_v28, %v301_v47  ;;  %v203_v39 = vadd.f32 %v187_v40, %v991_v55  ;;  %v369_v40 = vpop.permute.xlu0 %368 }
  0xf7   :  { %v341_v38 = vpop.permute.xlu1 %340 }
  0xf8   :  { %755 = vset.pattern.permute.xlu1 %v765_v9  ;;  %v488_v9 = vmul.f32 %v1020_v12, %v936_v29  ;;  %v202_v29 = vadd.f32 %v186_v18, %v981_v51  ;;  %v386_v48 = vmul.f32 %v1018_v11, %v341_v38  ;;  %v189_v51 = vmul.f32 %v994_v57, %v966_v43 }
  0xf9   :  { %530 = vperm.xlu1 %755, %v1090_v17  }
  0xfa   :  { %v302_v26 = vadd.f32 %v286_v25, %v202_v29 }
  0xfc   :  { %v79_v8 = vpop.permute.xlu1 %78  ;;  %v402_v63 = vadd.f32 %v386_v48, %v302_v26 }
  0xfd   :  { %v204_v10 = vadd.f32 %v188_v0, %v79_v8 }
  0xff   :  { %v304_v42 = vadd.f32 %v288_v13, %v204_v10 }
 0x101   :  { %v404_v46 = vadd.f32 %v388_v6, %v304_v42  ;;  %v245_v3 = vpop.permute.xlu1 %244 }
 0x102   :  { %v287_v0 = vmul.f32 %v1004_v61, %v245_v3 }
 0x103   :  { %v504_v35 = vadd.f32 %v488_v9, %v404_v46 }
 0x104   :  { %v303_v13 = vadd.f32 %v287_v0, %v203_v39 }
 0x105   :  { %v520_v9 = vmax.f32 %v504_v35, 0.0 }
 0x106   :  { %v437_v33 = vpop.permute.xlu1 %436 }
 0x107   :  { %v485_v23 = vmul.f32 %v1020_v12, %v437_v33 }
 0x109   :  { %v501_v41 = vadd.f32 %v485_v23, %v401_v37 }
 0x10a   :  { %v441_v32 = vpop.permute.xlu1 %440 }
 0x10b   :  { %v486_v27 = vmul.f32 %v1020_v12, %v441_v32  ;;  %v517_v52 = vmax.f32 %v501_v41, 0.0 }
 0x10d   :  { %v502_v49 = vadd.f32 %v486_v27, %v402_v63  ;;  %v194_v27 = vmul.f32 %v994_v57, %v971_v45 }
 0x10f   :  { %v518_v1 = vmax.f32 %v502_v49, 0.0  ;;  %v157_v54 = vpop.permute.xlu1 %156 }
 0x110   :  { %v190_v55 = vmul.f32 %v994_v57, %v157_v54 }
 0x111   :  { %v687_v20 = vpack.c.bf16 %v518_v1, %v517_v52  ;;  %v294_v52 = vmul.f32 %v1004_v61, %v1080_v16 }
 0x113   :  { %688 = vmatpush3.bf16.msra.mxu0 %v687_v20 }
 0x114   :  { %v345_v36 = vpop.permute.xlu1 %344  ;;  %689 = vmatprep.subr.bf16.mxu0 %v766_v19 }
 0x115   :  { %v387_v53 = vmul.f32 %v1018_v11, %v345_v36 }
 0x117   :  { %v403_v10 = vadd.f32 %v387_v53, %v303_v13 }
 0x119   :  { %v84_v62 = vpop.permute.xlu1 %83 }
 0x11a   :  { %v205_v2 = vadd.f32 %v189_v51, %v84_v62 }
 0x11c   :  { %v305_v44 = vadd.f32 %v289_v7, %v205_v2 }
 0x11d   :  { %v89_v5 = vpop.permute.xlu1 %88 }
 0x11e   :  { %v405_v34 = vadd.f32 %v389_v21, %v305_v44  ;;  %v206_v25 = vadd.f32 %v190_v55, %v89_v5 }
 0x120   :  { %v505_v38 = vadd.f32 %v489_v30, %v405_v34 }
 0x122   :  { %v257_v43 = vpop.permute.xlu1 %256  ;;  %v521_v23 = vmax.f32 %v505_v38, 0.0 }
 0x123   :  { %v290_v22 = vmul.f32 %v1004_v61, %v257_v43 }
 0x125   :  { %v306_v33 = vadd.f32 %v290_v22, %v206_v25 }
 0x127   :  { %v445_v8 = vpop.permute.xlu1 %444 }
 0x128   :  { %v487_v6 = vmul.f32 %v1020_v12, %v445_v8 }
 0x12a   :  { %v503_v14 = vadd.f32 %v487_v6, %v403_v10  ;;  %v473_v10 = vpop.permute.xlu0 %472 }
 0x12c   :  { %v519_v31 = vmax.f32 %v503_v14, 0.0  ;;  %v161_v42 = vpop.permute.xlu1 %160 }
 0x12d   :  { %v191_v36 = vmul.f32 %v994_v57, %v161_v42 }
 0x12e   :  { %v690_v46 = vpack.c.bf16 %v520_v9, %v519_v31 }
 0x130   :  { %v165_v15 = vpop.permute.xlu1 %164  ;;  %691 = vmatpush3.bf16.msra.mxu0 %v690_v46  ;;  %v393_v46 = vmul.f32 %v1018_v11, %v369_v40 }
 0x131   :  { %692 = vmatprep.subr.bf16.mxu0 %v766_v19  ;;  %v192_v51 = vmul.f32 %v994_v57, %v165_v15 }
 0x133   :  { %v208_v45 = vadd.f32 %v192_v51, %v1000_v60 }
 0x135   :  { %v357_v59 = vpop.permute.xlu1 %356 }
 0x136   :  { %v390_v28 = vmul.f32 %v1018_v11, %v357_v59 }
 0x138   :  { %v406_v29 = vadd.f32 %v390_v28, %v306_v33 }
 0x13a   :  { %v94_v3 = vpop.permute.xlu1 %93 }
 0x13b   :  { %v207_v7 = vadd.f32 %v191_v36, %v94_v3 }
 0x13f   :  { %v261_v18 = vpop.permute.xlu1 %260 }
 0x140   :  { %v291_v58 = vmul.f32 %v1004_v61, %v261_v18 }
 0x142   :  { %v307_v44 = vadd.f32 %v291_v58, %v207_v7 }
 0x143   :  { %v265_v24 = vpop.permute.xlu1 %264 }
 0x144   :  { %v292_v62 = vmul.f32 %v1004_v61, %v265_v24 }
 0x146   :  { %v308_v30 = vadd.f32 %v292_v62, %v208_v45 }
 0x148   :  { %v457_v35 = vpop.permute.xlu1 %456 }
 0x149   :  { %v490_v47 = vmul.f32 %v1020_v12, %v457_v35 }
 0x14b   :  { %v506_v48 = vadd.f32 %v490_v47, %v406_v29 }
 0x14d   :  { %v522_v26 = vmax.f32 %v506_v48, 0.0  ;;  %v169_v37 = vpop.permute.xlu1 %168 }
 0x14e   :  { %v193_v0 = vmul.f32 %v994_v57, %v169_v37  ;;  %v494_v57 = vmul.f32 %v1020_v12, %v473_v10 }
 0x14f   :  { %v693_v32 = vpack.c.bf16 %v522_v26, %v521_v23 }
 0x150   :  { %v209_v60 = vadd.f32 %v193_v0, %v1010_v4 }
 0x151   :  { %694 = vmatpush3.bf16.msra.mxu0 %v693_v32 }
 0x152   :  { %v361_v63 = vpop.permute.xlu1 %360  ;;  %695 = vmatprep.subr.bf16.mxu0 %v766_v19 }
 0x153   :  { %v391_v2 = vmul.f32 %v1018_v11, %v361_v63 }
 0x155   :  { %v407_v34 = vadd.f32 %v391_v2, %v307_v44 }
 0x156   :  { %v365_v41 = vpop.permute.xlu1 %364 }
 0x157   :  { %v392_v16 = vmul.f32 %v1018_v11, %v365_v41 }
 0x159   :  { %v408_v43 = vadd.f32 %v392_v16, %v308_v30 }
 0x15b   :  { %v109_v49 = vpop.permute.xlu1 %108 }
 0x15c   :  { %v210_v1 = vadd.f32 %v194_v27, %v109_v49 }
 0x15e   :  { %v310_v54 = vadd.f32 %v294_v52, %v210_v1 }
 0x160   :  { %v269_v20 = vpop.permute.xlu1 %268 }
 0x161   :  { %v293_v13 = vmul.f32 %v1004_v61, %v269_v20 }
 0x163   :  { %v309_v42 = vadd.f32 %v293_v13, %v209_v60 }
 0x165   :  { %v461_v21 = vpop.permute.xlu1 %460  ;;  %v409_v61 = vadd.f32 %v393_v46, %v309_v42 }
 0x166   :  { %v491_v5 = vmul.f32 %v1020_v12, %v461_v21 }
 0x168   :  { %v507_v39 = vadd.f32 %v491_v5, %v407_v34 }
 0x169   :  { %v465_v38 = vpop.permute.xlu1 %464 }
 0x16a   :  { %v492_v53 = vmul.f32 %v1020_v12, %v465_v38  ;;  %v523_v6 = vmax.f32 %v507_v39, 0.0 }
 0x16c   :  { %v508_v8 = vadd.f32 %v492_v53, %v408_v43 }
 0x16e   :  { %v524_v14 = vmax.f32 %v508_v8, 0.0  ;;  %v373_v9 = vpop.permute.xlu1 %372 }
 0x16f   :  { %v394_v31 = vmul.f32 %v1018_v11, %v373_v9 }
 0x170   :  { %v696_v15 = vpack.c.bf16 %v524_v14, %v523_v6 }
 0x171   :  { %v410_v59 = vadd.f32 %v394_v31, %v310_v54 }
 0x172   :  { %697 = vmatpush3.bf16.msra.mxu0 %v696_v15 }
 0x173   :  { %v469_v3 = vpop.permute.xlu1 %468  ;;  %698 = vmatprep.subr.bf16.mxu0 %v766_v19  ;;  %v510_v18 = vadd.f32 %v494_v57, %v410_v59 }
 0x174   :  { %v493_v4 = vmul.f32 %v1020_v12, %v469_v3 }
 0x175   :  { %v526_v22 = vmax.f32 %v510_v18, 0.0 }
 0x176   :  { %v509_v55 = vadd.f32 %v493_v4, %v409_v61 }
 0x178   :  { %v525_v24 = vmax.f32 %v509_v55, 0.0  ;;  %v531_v11 = vpop.permute.xlu1 %530 }
 0x179   :  { %v536_v28 = vrot.slane %v531_v11, %v277_v56 }
 0x17a   :  { %v699_v25 = vpack.c.bf16 %v526_v22, %v525_v24 }
 0x17c   :  { %700 = vmatpush3.bf16.msra.mxu0 %v699_v25 }
 0x17f   :  { %675 = vmatmul.mubr.f32.vlgmr.msra.gmra.mrb[0].mxu0 %v1090_v17 }
 0x252   :  { %v603_v33 = vpop.f32.mrb[0].mxu0 }
 0x253   :  { %v604_v35 = vadd.f32 %v603_v33, %v536_v28  ;;  %v676_v29 = vpop.f32.mrb[1].mxu0 }
 0x255   :  { %v624_v47 = vmul.f32 -1.442695, %v604_v35 }
 0x257   :  { %757 = vpow2.f32 %v624_v47 }
 0x261   :  { %v758_v19 = vpop.eup %757 }
 0x262   :  { %v610_v48 = vadd.f32 1.0, %v758_v19 }
 0x264   :  { %759 = vrcp.f32 %v610_v48 }
 0x26e   :  { %v760_v12 = vpop.eup %759 }
 0x26f   :  { %v613_v23 = vsub.f32 1.0, %v760_v12  ;;  %v615_v26 = vrot.slane %v760_v12, 7 }
 0x271   :  { %v618_v37 = vsel %vm617_vm1, %v613_v23, %v615_v26 }
 0x272   :  { %619 = vst [vmem:[%s1155_s3] sm:$0x3] %v618_v37 }

</bundles_post_ra>
